<compile_context>
chip_gen: v6e
topology: v6e:2x2x1
jax: 0.10.0
libtpu: 0.0.40
codegen_flags: <defaults>
</compile_context>

<pallas_src>
import functools
import math

import jax
import jax.numpy as jnp
from jax.experimental import pallas as pl
from jax.experimental.pallas import tpu as pltpu

EMBED_DIM = 128          # embedding_dim in the reference file
FFN_DIM = EMBED_DIM * 4


# ----------------------------------------------------------------------------
# LayerNormalization (the spec module): (x - mean) / unbiased_var, no eps.
# ----------------------------------------------------------------------------
def _layer_norm_math(t):
    """Two-pass centered variance (ddof=1), exact divide. f32 math."""
    d = t.shape[-1]
    mean = jnp.sum(t, axis=-1, keepdims=True) * (1.0 / d)
    centered = t - mean
    var = jnp.sum(centered * centered, axis=-1, keepdims=True) * (1.0 / (d - 1))
    return centered / var


def _layer_norm_kernel(x_ref, o_ref):
    o_ref[...] = _layer_norm_math(x_ref[...].astype(jnp.float32)).astype(o_ref.dtype)


def _pick_batch_block(B, S, *, bytes_per_row, target_rows, reserved_bytes=0,
                      vmem_budget_bytes=12 << 20, min_grid_steps=1):
    """Biggest batch block that (a) targets `target_rows` folded rows per grid
    step (amortizes the ~0.35us/step pipeline overhead, keeps the MXU fed) and
    (b) fits a conservative VMEM activation budget (<= v5e's 16 MiB scoped
    default).  Set min_grid_steps=2 on v7x (2 TensorCores) so both cores get
    work; on single-TC v5e/v6e splitting the grid only shrinks M."""
    budget_rows = max(S, (vmem_budget_bytes - reserved_bytes) // max(bytes_per_row, 1))
    rows = min(target_rows, budget_rows)
    b_blk = max(1, min(B, rows // max(S, 1)))
    if min_grid_steps > 1 and B >= min_grid_steps:
        b_blk = max(1, min(b_blk, B // min_grid_steps))
    while B % b_blk:
        b_blk -= 1
    return b_blk


def layer_normalization(x, *, batch_block=None, min_grid_steps=1):
    """Pallas kernel for the spec `LayerNormalization` on [B, S, D] input."""
    B, S, D = x.shape
    b_blk = batch_block if batch_block is not None else _pick_batch_block(
        B, S, bytes_per_row=24 * D, target_rows=2048, min_grid_steps=min_grid_steps)
    grid = (B // b_blk,)
    return pl.pallas_call(
        _layer_norm_kernel,
        out_shape=jax.ShapeDtypeStruct((B, S, D), x.dtype),
        grid_spec=pltpu.PrefetchScalarGridSpec(
            num_scalar_prefetch=0,
            grid=grid,
            in_specs=[pl.BlockSpec((b_blk, S, D), lambda b: (b, 0, 0))],
            out_specs=pl.BlockSpec((b_blk, S, D), lambda b: (b, 0, 0)),
        ),
        compiler_params=pltpu.CompilerParams(dimension_semantics=("parallel",)),
    )(x)


# ----------------------------------------------------------------------------
# Transformer_layer (host module of the spec LN) -- shared math used both by
# the Pallas kernel body and by the pure-JAX mirror used for validation.
# ----------------------------------------------------------------------------
def _forward_math(x3, wqkv, w1, b1, w2, b2, w3, b3, *, matmul_dtype,
                  precision=None):
    """attention + MLP + residuals + the spec LayerNormalization.

    Matmuls run in `matmul_dtype` (bf16 by default on the kernel path) with
    f32 accumulation; softmax and layer-norm math stay f32.  1/sqrt(D) is
    pre-folded into the q columns of `wqkv` (see fuse_params)."""
    bb, s, d = x3.shape
    m = bb * s
    cast = lambda t: t.astype(matmul_dtype)

    x2d = x3.reshape(m, d)                                   # fold batch into M
    qkv = jnp.dot(cast(x2d), cast(wqkv),
                  preferred_element_type=jnp.float32, precision=precision)
    q3 = qkv[:, :d].reshape(bb, s, d)                        # scale pre-folded
    k3 = qkv[:, d:2 * d].reshape(bb, s, d)
    v3 = qkv[:, 2 * d:].reshape(bb, s, d)

    # scores contract last dims directly (no k.T materialization).
    scores = jnp.einsum("bqd,bkd->bqk", cast(q3), cast(k3),
                        preferred_element_type=jnp.float32, precision=precision)
    # (reference computes an attention mask but never applies it -- skipped)
    e = jnp.exp(scores - jnp.max(scores, axis=-1, keepdims=True))
    probs = e / jnp.sum(e, axis=-1, keepdims=True)           # exact divide
    attn2d = jnp.einsum("bqk,bkd->bqd", cast(probs), cast(v3),
                        preferred_element_type=jnp.float32,
                        precision=precision).reshape(m, d)

    lin1 = jnp.dot(cast(attn2d), cast(w1),
                   preferred_element_type=jnp.float32, precision=precision) + b1
    ln1 = _layer_norm_math(lin1 + x2d)                       # spec LN, f32

    lin2 = jnp.dot(cast(ln1), cast(w2),
                   preferred_element_type=jnp.float32, precision=precision) + b2
    lin3 = jnp.dot(cast(jnp.maximum(lin2, 0.0)), cast(w3),
                   preferred_element_type=jnp.float32, precision=precision) + b3
    ln2 = _layer_norm_math(lin3 + ln1)                       # spec LN, f32
    return ln2.reshape(bb, s, d)


def _transformer_layer_kernel(x_ref, wqkv_ref, w1_ref, b1_ref, w2_ref, b2_ref,
                              w3_ref, b3_ref, out_ref, *, matmul_dtype):
    out = _forward_math(x_ref[...], wqkv_ref[...], w1_ref[...], b1_ref[...],
                        w2_ref[...], b2_ref[...], w3_ref[...], b3_ref[...],
                        matmul_dtype=matmul_dtype)
    out_ref[...] = out.astype(out_ref.dtype)


def fuse_params(raw_params):
    """One-time (init / param-load time) prep: fuse q/k/v into one (D, 3D)
    weight and fold 1/sqrt(D) into the q columns.  Hoists a per-call HBM
    concat and an [M, D] VPU multiply out of the kernel."""
    wq, wk, wv, w1, b1, w2, b2, w3, b3 = raw_params
    D = wq.shape[0]
    wqkv = jnp.concatenate([wq * (1.0 / math.sqrt(D)), wk, wv], axis=1)
    return (wqkv, w1, b1, w2, b2, w3, b3)


def transformer_layer(x, token_attention_masks, params, *,
                      matmul_dtype=jnp.bfloat16, out_dtype=None,
                      batch_block=None, min_grid_steps=1, vmem_limit_bytes=None):
    """x: [B, S, D] f32.  `params` is the fused 7-tuple from fuse_params().
    token_attention_masks is accepted for parity but unused (dead code in the
    reference forward).  bf16 matmuls by default (f32 accumulation)."""
    del token_attention_masks
    B, S, D = x.shape
    assert len(params) == 7, "pass fuse_params(raw_params) (fusion is one-time)"
    wqkv, w1, b1, w2, b2, w3, b3 = params
    F = w2.shape[1]
    # Folding batch rows into the matmul M dim is layout-free only when each
    # row block is sublane aligned (f32 sublane = 8).
    assert S % 8 == 0, "S must be a multiple of 8 (pad S or use batched einsums)"

    out_dtype = x.dtype if out_dtype is None else out_dtype
    # Conservative per-row live-VMEM estimate (f32 activations incl. the 4D
    # FFN intermediate, bf16 matmul copies, and the [row, S] score/exp block)
    # plus resident weights (f32 double-buffered + in-kernel bf16 copies).
    bytes_per_row = 112 * D + 16 * S
    reserved_bytes = 10 * (4 * D * D + 2 * D * F)
    b_blk = batch_block if batch_block is not None else _pick_batch_block(
        B, S, bytes_per_row=bytes_per_row, target_rows=512,
        reserved_bytes=reserved_bytes, min_grid_steps=min_grid_steps)
    grid = (B // b_blk,)

    def resident(shape):
        # Constant index_map -> weights/biases stay resident across the grid.
        return pl.BlockSpec(shape, lambda b: tuple(0 for _ in shape))

    kernel = functools.partial(_transformer_layer_kernel, matmul_dtype=matmul_dtype)
    return pl.pallas_call(
        kernel,
        out_shape=jax.ShapeDtypeStruct((B, S, D), out_dtype),
        grid_spec=pltpu.PrefetchScalarGridSpec(
            num_scalar_prefetch=0,
            grid=grid,
            in_specs=[
                pl.BlockSpec((b_blk, S, D), lambda b: (b, 0, 0)),   # x
                resident((D, 3 * D)),                               # wqkv (scaled q)
                resident((D, D)), resident((1, D)),                 # w1, b1
                resident((D, F)), resident((1, F)),                 # w2, b2
                resident((F, D)), resident((1, D)),                 # w3, b3
            ],
            out_specs=pl.BlockSpec((b_blk, S, D), lambda b: (b, 0, 0)),
        ),
        compiler_params=pltpu.CompilerParams(
            dimension_semantics=("parallel",),
            vmem_limit_bytes=vmem_limit_bytes),
    )(x, wqkv, w1, b1, w2, b2, w3, b3)


# ----------------------------------------------------------------------------
# Pure-JAX references for validation
# ----------------------------------------------------------------------------
def _ln_ref(t):
    m = jnp.mean(t, axis=-1, keepdims=True)
    v = jnp.var(t, axis=-1, keepdims=True, ddof=1)
    return (t - m) / v


def transformer_layer_ref(x, raw_params, *, precision=None):
    """Faithful torch-style forward (unfused weights, scale on the scores)."""
    wq, wk, wv, w1, b1, w2, b2, w3, b3 = raw_params
    D = x.shape[-1]
    q = jnp.einsum("bsd,de->bse", x, wq, precision=precision)
    k = jnp.einsum("bsd,de->bse", x, wk, precision=precision)
    v = jnp.einsum("bsd,de->bse", x, wv, precision=precision)
    scores = jnp.einsum("bsd,btd->bst", q, k, precision=precision) / math.sqrt(D)
    probs = jax.nn.softmax(scores, axis=-1)
    attn = jnp.einsum("bst,btd->bsd", probs, v, precision=precision)
    res1 = jnp.einsum("bsd,de->bse", attn, w1, precision=precision) + b1[0] + x
    ln1 = _ln_ref(res1)                          # the module's LayerNormalization
    h = jnp.maximum(jnp.einsum("bsd,df->bsf", ln1, w2, precision=precision) + b2[0], 0.0)
    res2 = jnp.einsum("bsf,fd->bsd", h, w3, precision=precision) + b3[0] + ln1
    return _ln_ref(res2)


def make_params(key, D=EMBED_DIM):
    """Synthetic parameters matching the module (q/k/v init: torch.rand;
    Linear weights pre-transposed so the forward does x @ W)."""
    ks = jax.random.split(key, 9)
    wq = jax.random.uniform(ks[0], (D, D), jnp.float32)
    wk = jax.random.uniform(ks[1], (D, D), jnp.float32)
    wv = jax.random.uniform(ks[2], (D, D), jnp.float32)
    lim1 = 1.0 / math.sqrt(D)
    w1 = jax.random.uniform(ks[3], (D, D), jnp.float32, -lim1, lim1)
    b1 = jax.random.uniform(ks[4], (1, D), jnp.float32, -lim1, lim1)
    w2 = jax.random.uniform(ks[5], (D, FFN_DIM), jnp.float32, -lim1, lim1)
    b2 = jax.random.uniform(ks[6], (1, FFN_DIM), jnp.float32, -lim1, lim1)
    lim3 = 1.0 / math.sqrt(FFN_DIM)
    w3 = jax.random.uniform(ks[7], (FFN_DIM, D), jnp.float32, -lim3, lim3)
    b3 = jax.random.uniform(ks[8], (1, D), jnp.float32, -lim3, lim3)
    return (wq, wk, wv, w1, b1, w2, b2, w3, b3)


if __name__ == "__main__":
    key = jax.random.PRNGKey(0)
    kx, kp = jax.random.split(key)

    B, S, D = 4, 8, EMBED_DIM
    x = jax.random.normal(kx, (B, S, D), jnp.float32)
    masks = jnp.ones((B, S), jnp.int32)      # parity input; unused (dead code)

    # ---- 1) spec module: LayerNormalization kernel vs torch math (tight) ----
    ln_out = jax.block_until_ready(layer_normalization(x))
    ln_ref = _ln_ref(x)
    assert ln_out.shape == x.shape and bool(jnp.all(jnp.isfinite(ln_out)))
    assert jnp.allclose(ln_out, ln_ref, atol=1e-3, rtol=1e-3), (
        f"LN mismatch, max abs err {float(jnp.max(jnp.abs(ln_out - ln_ref)))}")

    # ---- 2) restructuring fidelity (pure XLA, HIGHEST precision, tight) -----
    # Proves fused-qkv + folded 1/sqrt(D) + shared two-pass LN == torch math.
    raw = make_params(kp)
    fused = fuse_params(raw)                 # one-time param prep (hoisted)
    hi = jax.lax.Precision.HIGHEST
    mirror_f32 = _forward_math(x, *fused, matmul_dtype=jnp.float32, precision=hi)
    torch_ref = transformer_layer_ref(x, raw, precision=hi)
    assert jnp.allclose(mirror_f32, torch_ref, atol=2e-3, rtol=2e-3), (
        "restructured math mismatch, max abs err "
        f"{float(jnp.max(jnp.abs(mirror_f32 - torch_ref)))}")

    # ---- 3) Pallas kernel (default bf16 matmuls) vs its pure-JAX mirror -----
    # Same explicit bf16 operand casts + f32 accumulation on both sides, so
    # this comparison is precision-unambiguous across backends.
    out = jax.block_until_ready(transformer_layer(x, masks, fused))
    mirror_bf16 = _forward_math(x, *fused, matmul_dtype=jnp.bfloat16)
    assert out.shape == (B, S, D) and bool(jnp.all(jnp.isfinite(out)))
    assert jnp.allclose(out, mirror_bf16.astype(out.dtype), atol=1e-2, rtol=1e-2), (
        f"kernel(bf16) mismatch, max abs err "
        f"{float(jnp.max(jnp.abs(out - mirror_bf16)))}")

    # ---- 4) f32 matmul path smoke test (the f32 math itself is validated in
    # check 2; no tight cross-backend f32 compare since XLA's DEFAULT f32
    # matmul precision on TPU is backend-dependent). ---------------------------
    out_f32 = jax.block_until_ready(
        transformer_layer(x, masks, fused, matmul_dtype=jnp.float32))
    assert out_f32.shape == (B, S, D) and bool(jnp.all(jnp.isfinite(out_f32)))

    print("KERNEL_OK")
</pallas_src>

<mosaic_0001>
module attributes {stable_mosaic.version = 11 : i64} {
  func.func @_layer_norm_kernel(%arg0: i32, %arg1: memref<4x8x128xf32, #tpu.memory_space<vmem>>, %arg2: memref<4x8x128xf32, #tpu.memory_space<vmem>>) attributes {dimension_semantics = [#tpu.dimension_semantics<parallel>], iteration_bounds = array<i64: 1>, scalar_prefetch = 0 : i64, scratch_operands = 0 : i64, tpu.core_type = #tpu.core_type<tc>, window_params = [{transform_indices = @transform_0, window_bounds = array<i64: 4, 8, 128>}, {transform_indices = @transform_1, window_bounds = array<i64: 4, 8, 128>}]} {
    %c0 = arith.constant 0 : index
    %c0_0 = arith.constant 0 : index
    %c0_1 = arith.constant 0 : index
    %0 = vector.load %arg1[%c0, %c0_0, %c0_1] : memref<4x8x128xf32, #tpu.memory_space<vmem>>, vector<4x8x128xf32>
    %cst = arith.constant dense<0.000000e+00> : vector<4x8xf32>
    %1 = vector.multi_reduction <add>, %0, %cst [2] : vector<4x8x128xf32> to vector<4x8xf32>
    %2 = vector.shape_cast %1 : vector<4x8xf32> to vector<4x8x1xf32>
    %cst_2 = arith.constant 7.812500e-03 : f32
    %3 = vector.broadcast %cst_2 : f32 to vector<4x8x1xf32>
    %4 = arith.mulf %2, %3 : vector<4x8x1xf32>
    %5 = vector.broadcast %4 : vector<4x8x1xf32> to vector<4x8x128xf32>
    %6 = arith.subf %0, %5 : vector<4x8x128xf32>
    %7 = arith.mulf %6, %6 : vector<4x8x128xf32>
    %cst_3 = arith.constant dense<0.000000e+00> : vector<4x8xf32>
    %8 = vector.multi_reduction <add>, %7, %cst_3 [2] : vector<4x8x128xf32> to vector<4x8xf32>
    %9 = vector.shape_cast %8 : vector<4x8xf32> to vector<4x8x1xf32>
    %cst_4 = arith.constant 0.00787401571 : f32
    %10 = vector.broadcast %cst_4 : f32 to vector<4x8x1xf32>
    %11 = arith.mulf %9, %10 : vector<4x8x1xf32>
    %12 = vector.broadcast %11 : vector<4x8x1xf32> to vector<4x8x128xf32>
    %13 = arith.divf %6, %12 : vector<4x8x128xf32>
    %c0_5 = arith.constant 0 : index
    %c0_6 = arith.constant 0 : index
    %c0_7 = arith.constant 0 : index
    %14 = vector.load %arg2[%c0_5, %c0_6, %c0_7] : memref<4x8x128xf32, #tpu.memory_space<vmem>>, vector<4x8x128xf32>
    tpu.vector_store %arg2[%c0_5, %c0_6, %c0_7], %13 {strides = array<i32>} : memref<4x8x128xf32, #tpu.memory_space<vmem>>, vector<4x8x128xf32>,
    return
  }
  func.func @transform_0(%arg0: i32) -> (i32, i32, i32) {
    %c0_i32 = arith.constant 0 : i32
    %c0_i32_0 = arith.constant 0 : i32
    %c0_i32_1 = arith.constant 0 : i32
    return %arg0, %c0_i32, %c0_i32_0 : i32, i32, i32
  }
  func.func @transform_1(%arg0: i32) -> (i32, i32, i32) {
    %c0_i32 = arith.constant 0 : i32
    %c0_i32_0 = arith.constant 0 : i32
    %c0_i32_1 = arith.constant 0 : i32
    return %arg0, %c0_i32, %c0_i32_0 : i32, i32, i32
  }
}

</mosaic_0001>

<bundles_post_ra>
// kernel: tpu_custom_call.1
= control target key start
LH: loop header
LB: loop body
LE: loop exit
PB: predicated region body
PF: predicated region fallthrough
CT: control target
= control target key end

     0   :  { %6 = vsyncpa [#allocation3], 0  ;;  %s170_s0 = inlined_call_operand.hbm [shape: f32[4,8,128], index: 0, kind: input, shape index: {}]   ;;  %s171_s1 = inlined_call_operand.hbm [shape: f32[4,8,128], index: 1, kind: output, shape index: {}]  }
   0x1   :  { %7 = vsyncpa [#allocation4], 0  ;;  %s144_s6 = smov [#allocation2]  }
   0x2   :  { %s13_s7 = sshll.u32 %s144_s6, 4  ;;  %s14_s7 = int_to_ptr.vmem [resolvable:$true] %s13_s7 }
   0x3   :  { %s108_s8 = scalar_lea.vmem %s14_s7, 512  ;;  %p113_p1 = scmp.lt.s32.totalorder %s14_s7, %s14_s7 }
   0x4   :  { %p109_p0 = scmp.ne.s32.totalorder %s14_s7, %s108_s8  ;;  %p114_p2 = scmp.lt.s32.totalorder %s108_s8, %s108_s8 }
   0x6   :  { %p115_p3 = por %p114_p2, %p113_p1 }
   0x8   :  { %p116_p4 = pnand %p115_p3, %p109_p0 }
   0xa   :  { %119 = shalt.err (!%p116_p4)
}
   0xb   :  { %s145_s9 = smov 128   ;;  %s146_s10 = smov 8  }
   0xc   :  { %19 = dma.hbm_to_vmem [thread:$0]  %s170_s0, 512, %s14_s7, [#allocation3], %s145_s9, %s145_s9, %s146_s10  }
   0xd   :  { %140 = dma.done.wait [#allocation3], 512  }
   0xe   :  { %141 = vsyncadd [#allocation3], 4294966784  ;;  %v23_v0 = vld [vmem:[#allocation2] sm:$0xff]  ;;  %v25_v1 = vld [vmem:[#allocation2 + $0x10] sm:$0xff]  ;;  %s147_s0 = smov [#allocation5]  }
   0xf   :  { %27 = vadd.xlane.f32.xlu0 %v23_v0  ;;  %31 = vadd.xlane.f32.xlu1 %v25_v1  ;;  %v24_v2 = vld [vmem:[#allocation2 + $0x8] sm:$0xff]  ;;  %v26_v3 = vld [vmem:[#allocation2 + $0x18] sm:$0xff]  ;;  %s76_s13 = sshll.u32 %s147_s0, 4  ;;  %s77_s13 = int_to_ptr.vmem [resolvable:$true] %s76_s13 }
  0x10   :  { %s120_s14 = scalar_lea.vmem %s77_s13, 512  ;;  %p125_p6 = scmp.lt.s32.totalorder %s77_s13, %s77_s13 }
  0x11   :  { %p121_p5 = scmp.ne.s32.totalorder %s77_s13, %s120_s14  ;;  %p126_p7 = scmp.lt.s32.totalorder %s120_s14, %s120_s14 }
  0x13   :  { %29 = vadd.xlane.f32.xlu0 %v24_v2  ;;  %33 = vadd.xlane.f32.xlu1 %v26_v3  ;;  %p127_p8 = por %p126_p7, %p125_p6 }
  0x15   :  { %p128_p9 = pnand %p127_p8, %p121_p5 }
  0x98   :  { %v28_v4 = vpop.xlane.xlu0 %27  ;;  %v32_v5 = vpop.xlane.xlu1 %31 }
  0x99   :  { %v35_v6 = vmul.f32 0.0078125, %v28_v4  ;;  %v37_v7 = vmul.f32 0.0078125, %v32_v5 }
  0x9b   :  { %v39_v8 = vsub.f32 %v23_v0, %v35_v6  ;;  %v41_v9 = vsub.f32 %v25_v1, %v37_v7 }
  0x9c   :  { %v30_v10 = vpop.xlane.xlu0 %29  ;;  %v34_v11 = vpop.xlane.xlu1 %33 }
  0x9d   :  { %v36_v12 = vmul.f32 0.0078125, %v30_v10  ;;  %v43_v13 = vmul.f32 %v39_v8, %v39_v8  ;;  %v38_v14 = vmul.f32 0.0078125, %v34_v11  ;;  %v45_v17 = vmul.f32 %v41_v9, %v41_v9 }
  0x9f   :  { %v40_v15 = vsub.f32 %v24_v2, %v36_v12  ;;  %47 = vadd.xlane.f32.xlu0 %v43_v13  ;;  %v42_v16 = vsub.f32 %v26_v3, %v38_v14 }
  0xa1   :  { %v44_v18 = vmul.f32 %v40_v15, %v40_v15  ;;  %v46_v19 = vmul.f32 %v42_v16, %v42_v16 }
  0xa3   :  { %51 = vadd.xlane.f32.xlu0 %v45_v17  ;;  %49 = vadd.xlane.f32.xlu1 %v44_v18 }
  0xa7   :  { %53 = vadd.xlane.f32.xlu1 %v46_v19 }
 0x128   :  { %v48_v20 = vpop.xlane.xlu0 %47 }
 0x129   :  { %v55_v21 = vmul.f32 0.007874016, %v48_v20 }
 0x12b   :  { %92 = vrcp.f32 %v55_v21 }
 0x12c   :  { %v50_v22 = vpop.xlane.xlu1 %49  ;;  %v52_v23 = vpop.xlane.xlu0 %51 }
 0x12d   :  { %v56_v24 = vmul.f32 0.007874016, %v50_v22  ;;  %v57_v25 = vmul.f32 0.007874016, %v52_v23 }
 0x12f   :  { %94 = vrcp.f32 %v56_v24 }
 0x130   :  { %96 = vrcp.f32 %v57_v25  ;;  %v54_v26 = vpop.xlane.xlu1 %53 }
 0x131   :  { %v58_v27 = vmul.f32 0.007874016, %v54_v26 }
 0x133   :  { %98 = vrcp.f32 %v58_v27 }
 0x138   :  { %v93_v28 = vpop.eup %92 }
 0x139   :  { %v60_v29 = vmul.f32 %v93_v28, %v39_v8 }
 0x13b   :  { %67 = vst [vmem:[#allocation5] sm:$0xff] %v60_v29 }
 0x13c   :  { %v95_v30 = vpop.eup %94 }
 0x13d   :  { %v97_v31 = vpop.eup %96  ;;  %v62_v32 = vmul.f32 %v95_v30, %v40_v15 }
 0x13e   :  { %v64_v33 = vmul.f32 %v97_v31, %v41_v9 }
 0x13f   :  { %68 = vst [vmem:[#allocation5 + $0x8] sm:$0xff] %v62_v32 }
 0x140   :  { %v99_v34 = vpop.eup %98  ;;  %69 = vst [vmem:[#allocation5 + $0x10] sm:$0xff] %v64_v33 }
 0x141   :  { %v66_v35 = vmul.f32 %v99_v34, %v42_v16 }
 0x143   :  { %70 = vst [vmem:[#allocation5 + $0x18] sm:$0xff] %v66_v35 }
 0x144   :  { %131 = shalt.err (!%p128_p9)
}
 0x145   :  { %82 = dma.vmem_to_hbm [thread:$0]  %s77_s13, 512, %s171_s1, [#allocation4], %s145_s9, %s145_s9, %s146_s10  }
 0x146   :  { %142 = dma.done.wait [#allocation4], 512  }
 0x147   :  { %143 = vsyncadd [#allocation4], 4294966784 }
 0x148   :  { %86 = vsyncpa [#allocation3], 1 }
 0x149   :  { %87 = vsyncpa [#allocation4], 1 }

</bundles_post_ra>
